<compile_context>
chip_gen: v7x
topology: tpu7x:2x2x1
jax: 0.10.0
libtpu: 0.0.40
codegen_flags: <defaults>
</compile_context>

<pallas_src>
import functools

import jax
import jax.numpy as jnp
from jax.experimental import pallas as pl
from jax.experimental.pallas import tpu as pltpu


# ----------------------------------------------------------------------------
# Per-generation VMEM budgets & tile selection
# ----------------------------------------------------------------------------
@functools.lru_cache(maxsize=None)
def _vmem_budgets():
    """(vmem_limit_bytes, per-x-block byte budget) for the local TPU generation."""
    try:
        cap = pltpu.get_tpu_info().vmem_capacity_bytes
    except Exception:  # not on TPU / API drift -> conservative defaults
        cap = None
    if cap is None:
        return 32 * 1024 * 1024, 4 * 1024 * 1024
    if cap >= 96 * 1024 * 1024:                  # v5e / v6e: 128 MiB physical
        return 64 * 1024 * 1024, 8 * 1024 * 1024
    return 40 * 1024 * 1024, 4 * 1024 * 1024     # v7x: 64 MiB physical


def _sublane_align(dtype):
    """Channel-tile alignment: 8 for 4-byte, 16 for 2-byte, 32 for 1-byte dtypes."""
    return max(8, 32 // jnp.dtype(dtype).itemsize)


def _pick_tile(dim, align, cap):
    """Largest t <= cap with t % align == 0 and dim % t == 0.  Falls back to the
    full dim (a block equal to the array extent is always legal)."""
    best = 0
    t = align
    limit = min(dim, max(cap, align))
    while t <= limit:
        if dim % t == 0:
            best = t
        t += align
    return best if best > 0 else dim


def _lane_fold_factor(C, HW, lane=128):
    """Smallest k dividing C with (k * HW) % lane == 0 (1 if already aligned or
    impossible).  Folding (C, HW) -> (C//k, k*HW) keeps output stores lane-dense."""
    if HW % lane == 0:
        return 1
    for k in range(2, C + 1):
        if C % k == 0 and (k * HW) % lane == 0:
            return k
    return 1


def _choose_tiles(C, HW, itemsize, xblock_budget, align_c, thw_cap_extra=None):
    """(tc, thw) channel / lane tiles with tc*thw*itemsize <= xblock_budget."""
    max_elems = max(xblock_budget // max(1, itemsize), 128 * align_c)
    thw_cap = max(128, max_elems // align_c)
    if thw_cap_extra is not None:
        thw_cap = max(128, min(thw_cap, thw_cap_extra))
    if HW % 128 == 0 and HW <= thw_cap:
        thw = HW                      # full-HW lane tile: contiguous DMA slab per t
    else:
        thw = _pick_tile(HW, 128, thw_cap)
    tc = _pick_tile(C, align_c, max(align_c, min(128, max_elems // thw)))
    return tc, thw


def _ensure_multicore(n_outer, C, HW, tc, thw, align_c):
    """Shrink tiles if the parallel grid would collapse to a single step
    (keeps both TensorCores busy on v7x megacore)."""
    def steps(tc_, thw_):
        return n_outer * (C // tc_) * (HW // thw_)
    while steps(tc, thw) < 2:
        if thw % 256 == 0:
            thw //= 2
        elif tc % (2 * align_c) == 0:
            tc //= 2
        else:
            break
    return tc, thw


# ----------------------------------------------------------------------------
# Kernels
# ----------------------------------------------------------------------------
def _scalar_weighted_sum_kernel(w_ref, x_ref, o_ref, acc_ref):
    """'mean' mode: out = sum_t x[t] * w[b*T + t]   (w already includes 1/count)."""
    # w_ref: (B*T,) f32 in SMEM; x_ref/o_ref/acc_ref: (tc, thw)
    b = pl.program_id(0)
    t = pl.program_id(3)
    nt = pl.num_programs(3)

    @pl.when(t == 0)
    def _():
        acc_ref[...] = jnp.zeros_like(acc_ref)

    # TODO(synk): on v7x a lax.dot_general contracting T through the MXU could
    # replace this VPU FMA chain if the VPU ever becomes the binding slot.
    acc_ref[...] += x_ref[...].astype(jnp.float32) * w_ref[b * nt + t]

    @pl.when(t == nt - 1)
    def _():
        o_ref[...] = acc_ref[...].astype(o_ref.dtype)


def _attn_weighted_sum_kernel(x_ref, w_ref, o_ref, acc_ref):
    """'att_*' modes: out = sum_t x[t] * w[t, :]  (per-pixel f32 attention)."""
    # x_ref: (tcg, thw); w_ref: (T, thw) f32, VMEM-resident across the T axis;
    # o_ref/acc_ref: (tcg, thw)
    t = pl.program_id(4)
    nt = pl.num_programs(4)

    @pl.when(t == 0)
    def _():
        acc_ref[...] = jnp.zeros_like(acc_ref)

    # (1, thw) row broadcast against (tcg, thw).
    # TODO(synk): w_ref[pl.ds(t, tcg, stride=0), :] would sublane-broadcast in the
    # load itself and save a per-step VPU broadcast.
    acc_ref[...] += x_ref[...].astype(jnp.float32) * w_ref[pl.ds(t, 1), :]

    @pl.when(t == nt - 1)
    def _():
        o_ref[...] = acc_ref[...].astype(o_ref.dtype)


# ----------------------------------------------------------------------------
# pallas_call wrappers
# ----------------------------------------------------------------------------
def scalar_weighted_temporal_sum(x, w_bt):
    """x: (B, T, C, HW); w_bt: (B, T) f32.  Returns (B, C, HW) in x.dtype."""
    B, T, C, HW = x.shape
    vmem_limit, xbudget = _vmem_budgets()
    k = _lane_fold_factor(C, HW)
    Cf, HWf = C // k, k * HW            # lane-dense stores for small H*W levels
    xf = x.reshape(B, T, Cf, HWf)
    align_c = _sublane_align(x.dtype)
    tc, thw = _choose_tiles(Cf, HWf, x.dtype.itemsize, xbudget, align_c)
    tc, thw = _ensure_multicore(B, Cf, HWf, tc, thw, align_c)
    grid = (B, Cf // tc, HWf // thw, T)
    out = pl.pallas_call(
        _scalar_weighted_sum_kernel,
        out_shape=jax.ShapeDtypeStruct((B, Cf, HWf), x.dtype),
        grid=grid,
        in_specs=[
            pl.BlockSpec(memory_space=pltpu.MemorySpace.SMEM),   # (B*T,) scalar table
            pl.BlockSpec((None, None, tc, thw),
                         lambda b, ci, hj, t: (b, t, ci, hj)),
        ],
        out_specs=pl.BlockSpec((None, tc, thw),
                               lambda b, ci, hj, t: (b, ci, hj)),
        scratch_shapes=[pltpu.VMEM((tc, thw), jnp.float32)],
        compiler_params=pltpu.CompilerParams(
            dimension_semantics=("parallel", "parallel", "parallel", "arbitrary"),
            vmem_limit_bytes=vmem_limit),
    )(w_bt.reshape(B * T).astype(jnp.float32), xf)
    return out.reshape(B, C, HW)


def attn_weighted_temporal_sum(x5, attn):
    """x5: (B, T, G, Cg, HW); attn: (G, B, T, HW) f32.
    Returns (B, G, Cg, HW) in x5.dtype: out[b,g,c,s] = sum_t x5[b,t,g,c,s]*attn[g,b,t,s]."""
    B, T, G, Cg, HW = x5.shape
    vmem_limit, xbudget = _vmem_budgets()
    k = _lane_fold_factor(Cg, HW)
    Cgf, HWf = Cg // k, k * HW
    x5f = x5.reshape(B, T, G, Cgf, HWf)
    attn = attn.astype(jnp.float32)                    # keep softmax weights in f32
    attn_f = attn if k == 1 else jnp.tile(attn, (1, 1, 1, k))  # w[c_sub*HW + s] == w[s]
    align_c = _sublane_align(x5.dtype)
    # Keep the double-buffered VMEM-resident (T, thw) f32 attention slab within
    # the per-block budget as well.
    attn_thw_cap = max(128, (xbudget // (8 * T)) // 128 * 128)
    tcg, thw = _choose_tiles(Cgf, HWf, x5.dtype.itemsize, xbudget, align_c,
                             thw_cap_extra=attn_thw_cap)
    tcg, thw = _ensure_multicore(B * G, Cgf, HWf, tcg, thw, align_c)
    # Channel-tile axis just outside T: the attention block index is unchanged
    # across both, so its slab is DMA'd once per (b, g, hw-tile).
    grid = (B, G, HWf // thw, Cgf // tcg, T)
    out = pl.pallas_call(
        _attn_weighted_sum_kernel,
        out_shape=jax.ShapeDtypeStruct((B, G, Cgf, HWf), x5.dtype),
        grid=grid,
        in_specs=[
            pl.BlockSpec((None, None, None, tcg, thw),
                         lambda b, g, hj, ci, t: (b, t, g, ci, hj)),
            pl.BlockSpec((None, None, T, thw),
                         lambda b, g, hj, ci, t: (g, b, 0, hj)),
        ],
        out_specs=pl.BlockSpec((None, None, tcg, thw),
                               lambda b, g, hj, ci, t: (b, g, ci, hj)),
        scratch_shapes=[pltpu.VMEM((tcg, thw), jnp.float32)],
        compiler_params=pltpu.CompilerParams(
            dimension_semantics=("parallel", "parallel", "parallel", "parallel",
                                 "arbitrary"),
            vmem_limit_bytes=vmem_limit),
    )(x5f, attn_f)
    return out.reshape(B, G, Cg, HW)


# ----------------------------------------------------------------------------
# Glue: attention resizing (nn.Upsample(bilinear, align_corners=False) when
# upsampling, nn.AvgPool2d(kernel_size=w//H) otherwise).
# ----------------------------------------------------------------------------
def _resize_attn(attn, out_hw):
    """attn: (N, T, h, w) -> (N, T, H, W)."""
    N, T, h, w = attn.shape
    H, W = out_hw
    if H > w:
        return jax.image.resize(attn, (N, T, H, W), method="bilinear")
    k = w // H
    assert k >= 1 and h % k == 0 and w % k == 0, (
        "AvgPool2d branch assumes the attention spatial size is a multiple of "
        "the target spatial size")
    return attn.reshape(N, T, h // k, k, w // k, k).mean(axis=(3, 5))


class TemporalAggregator:
    """JAX/Pallas re-implementation of Temporal_Aggregator.forward.

    Padding is handled with always-masked math (identical result whether or not
    any element of pad_mask is set), so there is no data-dependent Python branch
    / host sync and the call is jit-compatible.
    """

    def __init__(self, mode="mean"):
        self.mode = mode

    def __call__(self, x, pad_mask=None, attn_mask=None):
        B, T, C, H, W = x.shape
        HW = H * W
        xf = x.reshape(B, T, C, HW)          # keep input dtype (bf16 stays bf16)
        mask = None if pad_mask is None else (~pad_mask).astype(jnp.float32)  # (B,T)

        if self.mode == "mean":
            if mask is None:
                w_bt = jnp.full((B, T), 1.0 / T, jnp.float32)
            else:
                # NOTE: a fully padded row divides by zero (nan/inf), exactly
                # like the PyTorch reference.
                count = jnp.sum(mask, axis=1, keepdims=True)             # (B,1)
                w_bt = mask / count
            out = scalar_weighted_temporal_sum(xf, w_bt)                 # (B,C,HW)
            return out.reshape(B, C, H, W)

        if self.mode == "att_mean":
            attn = jnp.mean(attn_mask.astype(jnp.float32), axis=0)       # (B,T,h,w)
            # the reference always bilinear-upsamples in att_mean mode
            attn = jax.image.resize(attn, (B, T, H, W), method="bilinear")
            if mask is not None:
                attn = attn * mask[:, :, None, None]
            x5 = xf.reshape(B, T, 1, C, HW)
            w = attn.reshape(1, B, T, HW)                                # stays f32
            out = attn_weighted_temporal_sum(x5, w)                      # (B,1,C,HW)
            return out.reshape(B, C, H, W)

        if self.mode == "att_group":
            n_heads, _, _, h, w_ = attn_mask.shape
            attn = attn_mask.astype(jnp.float32).reshape(n_heads * B, T, h, w_)
            attn = _resize_attn(attn, (H, W))                            # (nh*B,T,H,W)
            attn = attn.reshape(n_heads, B, T, HW)
            if mask is not None:
                attn = attn * mask[None, :, :, None]
            Cg = C // n_heads
            x5 = xf.reshape(B, T, n_heads, Cg, HW)                       # free reshape
            out = attn_weighted_temporal_sum(x5, attn)                   # (B,nh,Cg,HW)
            # reshape == torch.cat over heads (channel order is preserved)
            return out.reshape(B, C, H, W)

        raise ValueError(f"unknown mode {self.mode}")


# ----------------------------------------------------------------------------
# Demo / self-check
# ----------------------------------------------------------------------------
if __name__ == "__main__":
    key = jax.random.PRNGKey(0)
    B, T, C, H, W = 2, 8, 16, 16, 16
    n_heads, ah, aw = 4, 8, 8

    k1, k2, k3 = jax.random.split(key, 3)
    x = jax.random.normal(k1, (B, T, C, H, W), jnp.float32)
    attn_mask = jax.nn.softmax(
        jax.random.normal(k2, (n_heads, B, T, ah, aw), jnp.float32), axis=2)
    pad_mask = jnp.zeros((B, T), bool).at[:, T - 2:].set(True)  # last 2 steps padded
    maskf = (~pad_mask).astype(jnp.float32)

    # ---- mode='mean' with pad_mask ----
    out_mean = TemporalAggregator("mean")(x, pad_mask=pad_mask)
    jax.block_until_ready(out_mean)
    ref_mean = (x * maskf[:, :, None, None, None]).sum(1) / maskf.sum(1)[:, None, None, None]
    assert out_mean.shape == (B, C, H, W)
    assert jnp.allclose(out_mean, ref_mean, atol=1e-5, rtol=1e-5)

    # ---- mode='mean' without pad_mask ----
    out_mean_np = TemporalAggregator("mean")(x)
    jax.block_until_ready(out_mean_np)
    assert jnp.allclose(out_mean_np, x.mean(axis=1), atol=1e-5, rtol=1e-5)

    # ---- mode='att_mean' ----
    out_am = TemporalAggregator("att_mean")(x, pad_mask=pad_mask, attn_mask=attn_mask)
    jax.block_until_ready(out_am)
    a = jax.image.resize(attn_mask.mean(0), (B, T, H, W), method="bilinear")
    a = a * maskf[:, :, None, None]
    ref_am = (x * a[:, :, None, :, :]).sum(1)
    assert jnp.allclose(out_am, ref_am, atol=1e-4, rtol=1e-4)

    # ---- mode='att_group' ----
    out_ag = TemporalAggregator("att_group")(x, pad_mask=pad_mask, attn_mask=attn_mask)
    jax.block_until_ready(out_ag)
    ag = jax.image.resize(
        attn_mask.reshape(n_heads * B, T, ah, aw), (n_heads * B, T, H, W),
        method="bilinear").reshape(n_heads, B, T, H, W) * maskf[None, :, :, None, None]
    Cg = C // n_heads
    ref_groups = [
        (x[:, :, g * Cg:(g + 1) * Cg] * ag[g][:, :, None, :, :]).sum(1)
        for g in range(n_heads)
    ]
    ref_ag = jnp.concatenate(ref_groups, axis=1)
    assert out_ag.shape == (B, C, H, W)
    assert jnp.allclose(out_ag, ref_ag, atol=1e-4, rtol=1e-4)

    # ---- small H*W (deep encoder level): exercises the lane-fold path ----
    Hs = Ws = 8                                    # HW = 64 -> channels folded (k=2)
    xs = jax.random.normal(k3, (B, T, C, Hs, Ws), jnp.float32)
    out_s = TemporalAggregator("mean")(xs, pad_mask=pad_mask)
    jax.block_until_ready(out_s)
    ref_s = (xs * maskf[:, :, None, None, None]).sum(1) / maskf.sum(1)[:, None, None, None]
    assert jnp.allclose(out_s, ref_s, atol=1e-5, rtol=1e-5)

    attn_small = jax.nn.softmax(
        jax.random.normal(k2, (n_heads, B, T, 4, 4), jnp.float32), axis=2)
    out_sg = TemporalAggregator("att_group")(xs, pad_mask=pad_mask, attn_mask=attn_small)
    jax.block_until_ready(out_sg)
    ags = jax.image.resize(
        attn_small.reshape(n_heads * B, T, 4, 4), (n_heads * B, T, Hs, Ws),
        method="bilinear").reshape(n_heads, B, T, Hs, Ws) * maskf[None, :, :, None, None]
    ref_sg = jnp.concatenate(
        [(xs[:, :, g * Cg:(g + 1) * Cg] * ags[g][:, :, None, :, :]).sum(1)
         for g in range(n_heads)], axis=1)
    assert jnp.allclose(out_sg, ref_sg, atol=1e-4, rtol=1e-4)

    print("KERNEL_OK")
</pallas_src>

<mosaic_0001>
module attributes {stable_mosaic.version = 11 : i64} {
  func.func @_scalar_weighted_sum_kernel(%arg0: i32, %arg1: i32, %arg2: i32, %arg3: i32, %arg4: memref<16xf32, #tpu.memory_space<smem>>, %arg5: memref<1x1x16x256xf32, #tpu.memory_space<vmem>>, %arg6: memref<1x16x256xf32, #tpu.memory_space<vmem>>, %arg7: memref<16x256xf32, #tpu.memory_space<vmem>>) attributes {dimension_semantics = [#tpu.dimension_semantics<parallel>, #tpu.dimension_semantics<parallel>, #tpu.dimension_semantics<parallel>, #tpu.dimension_semantics<arbitrary>], iteration_bounds = array<i64: 2, 1, 1, 8>, scalar_prefetch = 0 : i64, scratch_operands = 1 : i64, tpu.core_type = #tpu.core_type<tc>, window_params = [{transform_indices = @transform_0, window_bounds = array<i64: 16>}, {transform_indices = @transform_1, window_bounds = array<i64: 1, 1, 16, 256>}, {transform_indices = @transform_2, window_bounds = array<i64: 1, 16, 256>}]} {
    %c0_i32 = arith.constant 0 : i32
    %0 = arith.cmpi eq, %arg3, %c0_i32 : i32
    %1 = arith.extui %0 : i1 to i32
    %c0_i32_0 = arith.constant 0 : i32
    %2 = arith.cmpi ne, %1, %c0_i32_0 : i32
    scf.if %2 {
      %cst = arith.constant 0.000000e+00 : f32
      %17 = vector.broadcast %cst : f32 to vector<16x256xf32>
      %c0_9 = arith.constant 0 : index
      %c0_10 = arith.constant 0 : index
      %18 = vector.load %arg7[%c0_9, %c0_10] : memref<16x256xf32, #tpu.memory_space<vmem>>, vector<16x256xf32>
      tpu.vector_store %arg7[%c0_9, %c0_10], %17 {strides = array<i32>} : memref<16x256xf32, #tpu.memory_space<vmem>>, vector<16x256xf32>,
    } else {
    }
    %c0 = arith.constant 0 : index
    %c0_1 = arith.constant 0 : index
    %3 = vector.load %arg7[%c0, %c0_1] : memref<16x256xf32, #tpu.memory_space<vmem>>, vector<16x256xf32>
    %c0_2 = arith.constant 0 : index
    %c0_3 = arith.constant 0 : index
    %c0_4 = arith.constant 0 : index
    %c0_5 = arith.constant 0 : index
    %4 = vector.load %arg5[%c0_2, %c0_3, %c0_4, %c0_5] : memref<1x1x16x256xf32, #tpu.memory_space<vmem>>, vector<1x1x16x256xf32>
    %5 = vector.shape_cast %4 : vector<1x1x16x256xf32> to vector<16x256xf32>
    %c8_i32 = arith.constant 8 : i32
    %6 = arith.muli %arg0, %c8_i32 : i32
    %7 = arith.addi %6, %arg3 : i32
    %8 = arith.index_cast %7 : i32 to index
    %9 = memref.load %arg4[%8] : memref<16xf32, #tpu.memory_space<smem>>
    %10 = vector.broadcast %9 : f32 to vector<16x256xf32>
    %11 = arith.mulf %5, %10 : vector<16x256xf32>
    %12 = arith.addf %3, %11 : vector<16x256xf32>
    %c0_6 = arith.constant 0 : index
    %c0_7 = arith.constant 0 : index
    %13 = vector.load %arg7[%c0_6, %c0_7] : memref<16x256xf32, #tpu.memory_space<vmem>>, vector<16x256xf32>
    tpu.vector_store %arg7[%c0_6, %c0_7], %12 {strides = array<i32>} : memref<16x256xf32, #tpu.memory_space<vmem>>, vector<16x256xf32>,
    %c7_i32 = arith.constant 7 : i32
    %14 = arith.cmpi eq, %arg3, %c7_i32 : i32
    %15 = arith.extui %14 : i1 to i32
    %c0_i32_8 = arith.constant 0 : i32
    %16 = arith.cmpi ne, %15, %c0_i32_8 : i32
    scf.if %16 {
      %c0_9 = arith.constant 0 : index
      %c0_10 = arith.constant 0 : index
      %17 = vector.load %arg7[%c0_9, %c0_10] : memref<16x256xf32, #tpu.memory_space<vmem>>, vector<16x256xf32>
      %c0_11 = arith.constant 0 : index
      %c0_12 = arith.constant 0 : index
      %c0_13 = arith.constant 0 : index
      %18 = vector.load %arg6[%c0_11, %c0_12, %c0_13] : memref<1x16x256xf32, #tpu.memory_space<vmem>>, vector<1x16x256xf32>
      %19 = vector.shape_cast %18 : vector<1x16x256xf32> to vector<16x256xf32>
      %20 = vector.shape_cast %17 : vector<16x256xf32> to vector<1x16x256xf32>
      tpu.vector_store %arg6[%c0_11, %c0_12, %c0_13], %20 {strides = array<i32>} : memref<1x16x256xf32, #tpu.memory_space<vmem>>, vector<1x16x256xf32>,
    } else {
    }
    return
  }
  func.func @transform_0(%arg0: i32, %arg1: i32, %arg2: i32, %arg3: i32) -> i32 {
    %c0_i32 = arith.constant 0 : i32
    %c0_i32_0 = arith.constant 0 : i32
    return %c0_i32 : i32
  }
  func.func @transform_1(%arg0: i32, %arg1: i32, %arg2: i32, %arg3: i32) -> (i32, i32, i32, i32) {
    %c0_i32 = arith.constant 0 : i32
    return %arg0, %arg3, %arg1, %arg2 : i32, i32, i32, i32
  }
  func.func @transform_2(%arg0: i32, %arg1: i32, %arg2: i32, %arg3: i32) -> (i32, i32, i32) {
    %c0_i32 = arith.constant 0 : i32
    return %arg0, %arg1, %arg2 : i32, i32, i32
  }
}

</mosaic_0001>

<bundles_post_ra>
// kernel: tpu_custom_call.1
= control target key start
LH: loop header
LB: loop body
LE: loop exit
PB: predicated region body
PF: predicated region fallthrough
CT: control target
= control target key end

     0   :  { %s1011_s0 = inlined_call_operand.hbm [shape: f32[16], index: 0, kind: input, shape index: {}]   ;;  %s1012_s1 = inlined_call_operand.hbm [shape: f32[2,8,16,256], index: 1, kind: input, shape index: {}]   ;;  %s1013_s2 = inlined_call_operand.hbm [shape: f32[2,16,256], index: 2, kind: output, shape index: {}]  }
   0x1   :  { %1027 = sst [smem:[#allocation18_spill]] %s1011_s0 }
   0x2   :  { %1028 = sst [smem:[#allocation19_spill]] %s1013_s2 }
   0x3   :  { %7 = vsyncpa [#allocation6], 0 }
   0x4   :  { %8 = vsyncpa [#allocation4], 0 }
   0x5   :  { %10 = vsyncpa [#allocation4 + $0x1], 0 }
   0x6   :  { %11 = vsyncpa [#allocation5], 0 }
   0x7   :  { %13 = vsyncpa [#allocation5 + $0x1], 0  ;;  %s732_s9 = smov 0   ;;  %s734_s10 = smov 0  }
   0x8   :  { %s736_s11 = smov 0   ;;  %s738_s12 = smov 0  }
   0x9   :  { %s740_s13 = smov 0   ;;  %s742_s14 = smov 0  }
   0xa   :  { %s744_s15 = smov 0   ;;  %s746_s16 = smov 0  }
   0xb   :  { %s748_s17 = smov 0   ;;  %s750_s18 = smov 0  }
   0xc   :  { %s752_s19 = smov 0  }
   0xd LB: > { %1029 = sst [smem:[#allocation12_spill]] %s667_s9  ;;  %s398_s20 = sadd.s32 4294967295, %s707_s19   ;;  %s707_s19 = sphi %s752_s19, %s1066_s19   ;;  %s703_s18 = sphi %s750_s18, %s1065_s18   ;;  %s699_s17 = sphi %s748_s17, %s1057_s17   ;;  %s695_s16 = sphi %s746_s16, %s1064_s16   ;;  %s691_s15 = sphi %s744_s15, %s1056_s15   ;;  %s687_s14 = sphi %s742_s14, %s1063_s14   ;;  %s683_s13 = sphi %s740_s13, %s1062_s13   ;;  %s679_s12 = sphi %s738_s12, %s1061_s12   ;;  %s675_s11 = sphi %s736_s11, %s1060_s11   ;;  %s671_s10 = sphi %s734_s10, %s1059_s10   ;;  %s667_s9 = sphi %s732_s9, %s1058_s9  }
   0xe   : > { %1030 = sst [smem:[#allocation13_spill]] %s699_s17  ;;  %s399_s21 = sadd.s32 4294967294, %s707_s19  }
   0xf   : > { %1031 = sst [smem:[#allocation14_spill]] %s707_s19  ;;  %p86_p0 = scmp.ne.s32.totalorder %s687_s14, %s683_s13 }
  0x10   : > { %p87_p1 = scmp.eq.s32.totalorder %s707_s19, 0  ;;  %p92_p2 = scmp.ne.s32.totalorder %s683_s13, %s679_s12 }
  0x11   : > { %p792_p3 = scmp.eq.s32.totalorder %s398_s20, 0  ;;  %p119_p5 = scmp.ne.s32.totalorder %s675_s11, %s671_s10 }
  0x12   : > { %p797_p4 = por %p87_p1, %p86_p0  ;;  %p120_p7 = scmp.eq.s32.totalorder %s398_s20, 15 }
  0x13   : > { %s1032_s23 = scalar_select %p792_p3, 1, 0 }
  0x14   : > { %p805_p6 = por %p792_p3, %p92_p2  ;;  %p125_p8 = scmp.ne.s32.totalorder %s671_s10, %s667_s9 }
  0x15   : > { %p126_p9 = scmp.eq.s32.totalorder %s399_s21, 15  ;;  %p811_p10 = por %p120_p7, %p119_p5 }
  0x16   : > { %s1034_s26 = scalar_select %p805_p6, 1, 0 }
  0x17   : > { %s1035_s27 = scalar_select %p811_p10, 1, 0 }
  0x18   : > { %p400_p11 = scmp.ge.s32.totalorder %s707_s19, 1  ;;  %p816_p12 = por %p126_p9, %p125_p8 }
  0x19   : > { %1036 = sst [smem:[#allocation15_spill]] %s1035_s27  ;;  %p133_p13 = scmp.lt.s32.totalorder %s707_s19, 17 }
  0x1a   : > { %s1037_s28 = scalar_select %p816_p12, 1, 0 }
  0x1b   : > { %p821_p0 = pnand %p400_p11, %p133_p13  ;;  %p441_p1 = scmp.lt.s32.totalorder %s707_s19, 16 }
  0x1c   : > { %1038 = sst [smem:[#allocation16_spill]] %s1037_s28  ;;  %s34_s3 = sadd.s32 1, %s699_s17 }
  0x1d   : > { %p428_p2 = pneg %p821_p0  ;;  %p830_p6 = pnand %p441_p1, %p797_p4 }
  0x1e   : > { %p837_p7 = scmp.ge.s32.totalorder %s34_s3, 8  ;;  %s1042_s0 = sld [smem:[#allocation18_spill]] }
  0x1f   : > { %p429_p5 = pnand %p428_p2, %p792_p3 }
  0x21   : > { %p540_p9 = pneg %p429_p5 }
  0x24   : > { %s538_s7 = scalar_lea.hbm %s1042_s0, 16 }
  0x25   : > { %p539_p8 = scmp.ne.s32.totalorder %s1042_s0, %s538_s7  ;;  %p545_p13 = scmp.lt.u32.totalorder %s538_s7, %s1042_s0 }
  0x27   : > { %p541_p4 = pnand %p540_p9, %p539_p8 }
  0x29   : > { %p542_p11 = pneg %p541_p4 }
  0x2b   : > { %p547_p1 = pnand %p545_p13, %p542_p11 }
  0x2d   : > { %550 = shalt.err (!%p547_p1)
}
  0x2e   : > { %s709_s25 = smov [#allocation3]   ;;  %s1068_s3 = smov (%p837_p7, %s34_s3), 0 }
  0x2f   : > { %431 = dma.hbm_to_smem (!%p429_p5), %s1042_s0, 16, %s709_s25, [#allocation6]  }
  0x30   : > { %1043 = sst [smem:[#allocation17_spill]] %s1068_s3  ;;  %s45_s5 = sadd.s32 1, %s703_s18 }
  0x31   : > { %s155_s6 = sand.u32 1, %s687_s14   ;;  %s1070_s5 = smov (!%p837_p7, %s45_s5), %s703_s18 }
  0x32   : > { %s71_s22 = ssub.s32 %s699_s17, %s1068_s3  ;;  %p47_p2 = scmp.ge.s32.totalorder %s1070_s5, 2 }
  0x33   : > { %s403_s24 = sshll.u32 %s155_s6, 5  ;;  %s404_s7 = sshll.u32 %s699_s17, 2 }
  0x34   : > { %s1072_s5 = smov (%p47_p2, %s1070_s5), 0  ;;  %s405_s8 = sshll.u32 %s703_s18, 5 }
  0x35   : > { %s159_s12 = scalar_lea.vmem [#allocation7], %s403_s24  ;;  %s70_s21 = ssub.s32 %s703_s18, %s1072_s5 }
  0x36   : > { %s173_s20 = sshll.u32 %s159_s12, 4  ;;  %s170_s25 = sadd.s32 %s405_s8, %s404_s7  ;;  %s885_s20 = int_to_ptr.vmem [resolvable:$true] %s173_s20 }
  0x37   : > { %s72_s4 = sor.u32 %s71_s22, %s70_s21  ;;  %p107_p5 = scmp.eq.s32.totalorder %s70_s21, 0 }
  0x38   : > { %p77_p8 = scmp.eq.s32.totalorder %s72_s4, 0  ;;  %s406_s0 = sshll.u32 %s170_s25, 7 }
  0x39   : > { %s1044_s28 = sadd.s32 1, %s675_s11  ;;  %s1045_s3 = sadd.s32 1, %s687_s14 }
  0x3a   : > { %s873_s9 = scalar_select %p107_p5, %s675_s11, %s1044_s28  }
  0x3b   : > { %s878_s19 = scalar_select %p77_p8, %s687_s14, %s1045_s3  }
  0x3c   : > { %s883_s27 = scalar_lea.hbm %s1012_s1, %s406_s0  ;;  %s887_s22 = scalar_lea.sflag [#allocation4], %s155_s6 }
  0x3d   : > { %s551_s24 = scalar_lea.hbm %s883_s27, 512  ;;  %p553_p9 = pneg %p830_p6 }
  0x3e   : > { %p552_p7 = scmp.ne.s32.totalorder %s883_s27, %s551_s24  ;;  %s556_s0 = scalar_lea.hbm %s1012_s1, 8192 }
  0x3f   : > { %p557_p13 = scmp.lt.u32.totalorder %s883_s27, %s1012_s1  ;;  %p558_p1 = scmp.lt.u32.totalorder %s556_s0, %s551_s24 }
  0x40   : > { %p554_p4 = pnand %p553_p9, %p552_p7  ;;  %p560_p5 = scmp.lt.u32.totalorder %s551_s24, %s883_s27 }
  0x41   : > { %p559_p2 = por %p558_p1, %p557_p13 }
  0x42   : > { %p555_p11 = pneg %p554_p4 }
  0x43   : > { %p561_p8 = por %p560_p5, %p559_p2 }
  0x45   : > { %p562_p12 = pnand %p561_p8, %p555_p11 }
  0x47   : > { %565 = shalt.err (!%p562_p12)
}
  0x48   : > { %s566_s6 = scalar_lea.vmem %s885_s20, 512  ;;  %s710_s7 = smov [#allocation7]  }
  0x49   : > { %p567_p7 = scmp.ne.s32.totalorder %s885_s20, %s566_s6  ;;  %s571_s8 = sshll.u32 %s710_s7, 4  ;;  %s572_s8 = int_to_ptr.vmem [resolvable:$false] %s571_s8 }
  0x4a   : > { %s573_s12 = scalar_lea.vmem %s572_s8, 1024  ;;  %p574_p3 = scmp.lt.s32.totalorder %s885_s20, %s572_s8 }
  0x4b   : > { %p569_p4 = pnand %p567_p7, %p553_p9  ;;  %p575_p13 = scmp.lt.s32.totalorder %s573_s12, %s566_s6 }
  0x4d   : > { %p570_p10 = pneg %p569_p4  ;;  %p576_p1 = por %p575_p13, %p574_p3 }
  0x4f   : > { %p577_p2 = pnand %p576_p1, %p570_p10 }
  0x51   : > { %580 = shalt.err (!%p577_p2)
}
  0x52   : > { %s711_s21 = smov 256   ;;  %s712_s25 = smov 16  }
  0x53   : > { %435 = dma.hbm_to_vmem [thread:$0]  (!%p830_p6), %s883_s27, 512, %s885_s20, %s887_s22, %s711_s21, %s711_s21, %s712_s25  }
  0x54   : > { %185 = sbr.rel (%p821_p0) target bundleno = 158 (0x9e), region = 28  ;;  %p1046_p12 = scmp.ne.s32.totalorder (!%p821_p0), %s1032_s23, 0 }
  0x5b   : > { %654 = dma.done.wait (%p1046_p12), [#allocation6], 16  }
  0x5c   : > { %656 = vsyncadd (%p1046_p12), [#allocation6], 4294967280  ;;  %s191_s4 = sand.u32 1, %s683_s13   ;;  %p1047_p3 = scmp.ne.s32.totalorder %s1034_s26, 0 }
  0x5d   : > { %s409_s24 = sshll.u32 %s191_s4, 5  ;;  %s192_s28 = scalar_lea.sflag [#allocation4], %s191_s4 }
  0x5e   : > { %s195_s2 = scalar_lea.vmem [#allocation7], %s409_s24 }
  0x5f   : > { %658 = dma.done.wait (%p1047_p3), %s192_s28, 512  }
  0x60   : > { %660 = vsyncadd (%p1047_p3), %s192_s28, 4294966784 }
  0x61   : > { %200 = sfence }
  0x62   : > { %s214_s27 = sand.u32 1, %s671_s10   ;;  %p411_p6 = scmp.ne.s32.totalorder %s691_s15, 0 }
  0x63   : > { %s410_s29 = sshll.u32 %s214_s27, 5  ;;  %v713_v0 = vmov (!%p411_p6), 0.0  }
  0x64   : > { %s929_s30 = scalar_lea.vmem [#allocation8], %s410_s29  ;;  %224 = sbr.rel (%p411_p6) target bundleno = 107 (0x6b), region = 40  ;;  %225 = vst [vmem:[#allocation2] sm:$0xff] (!%p411_p6), %v713_v0  ;;  %226 = vst [vmem:[#allocation2 + $0x8] sm:$0xff] (!%p411_p6), %v713_v0 }
  0x65   : > { %227 = vst [vmem:[#allocation2 + $0x10] sm:$0xff] (!%p411_p6), %v713_v0  ;;  %228 = vst [vmem:[#allocation2 + $0x18] sm:$0xff] (!%p411_p6), %v713_v0 }
  0x6b PF: > { %s412_s23 = sshll.u32 %s695_s16, 3  ;;  %v233_v1 = vld [vmem:[%s195_s2] sm:$0xff]  ;;  %v234_v2 = vld [vmem:[%s195_s2 + $0x8] sm:$0xff]  ;;  %v235_v3 = vld [vmem:[%s195_s2 + $0x10] sm:$0xff]  ;;  %p413_p10 = scmp.ne.s32.totalorder %s691_s15, 7 }
  0x6c   : > { %s238_s26 = sadd.s32 %s691_s15, %s412_s23  ;;  %v236_v4 = vld [vmem:[%s195_s2 + $0x18] sm:$0xff]  ;;  %v229_v5 = vld [vmem:[#allocation2] sm:$0xff]  ;;  %v230_v7 = vld [vmem:[#allocation2 + $0x8] sm:$0xff] }
  0x6d   : > { %s239_s20 = sld [smem:[#allocation3 + %s238_s26]]  ;;  %v231_v8 = vld [vmem:[#allocation2 + $0x10] sm:$0xff]  ;;  %v232_v9 = vld [vmem:[#allocation2 + $0x18] sm:$0xff] }
  0x73   : > { %v240_v6 = vstv %s239_s20  ;;  %256 = sbr.rel (%p413_p10) target bundleno = 130 (0x82), region = 44 }
  0x74   : > { %v241_v10 = vmul.f32 %v240_v6, %v233_v1  ;;  %v242_v11 = vmul.f32 %v240_v6, %v234_v2  ;;  %v243_v12 = vmul.f32 %v240_v6, %v235_v3  ;;  %v244_v13 = vmul.f32 %v240_v6, %v236_v4 }
  0x76   : > { %v245_v14 = vadd.f32 %v241_v10, %v229_v5  ;;  %v246_v15 = vadd.f32 %v242_v11, %v230_v7  ;;  %v247_v16 = vadd.f32 %v243_v12, %v231_v8  ;;  %v248_v17 = vadd.f32 %v244_v13, %v232_v9 }
  0x78   : > { %249 = vst [vmem:[#allocation2] sm:$0xff] %v245_v14  ;;  %250 = vst [vmem:[#allocation2 + $0x8] sm:$0xff] %v246_v15 }
  0x79   : > { %251 = vst [vmem:[#allocation2 + $0x10] sm:$0xff] %v247_v16  ;;  %252 = vst [vmem:[#allocation2 + $0x18] sm:$0xff] %v248_v17 }
  0x7f   : > { %v257_v18 = vld [vmem:[#allocation2] sm:$0xff]  ;;  %v258_v19 = vld [vmem:[#allocation2 + $0x8] sm:$0xff] }
  0x80   : > { %v259_v20 = vld [vmem:[#allocation2 + $0x10] sm:$0xff]  ;;  %261 = vst [vmem:[%s929_s30] sm:$0xff] %v257_v18  ;;  %262 = vst [vmem:[%s929_s30 + $0x8] sm:$0xff] %v258_v19  ;;  %v260_v21 = vld [vmem:[#allocation2 + $0x18] sm:$0xff] }
  0x81   : > { %263 = vst [vmem:[%s929_s30 + $0x10] sm:$0xff] %v259_v20  ;;  %264 = vst [vmem:[%s929_s30 + $0x18] sm:$0xff] %v260_v21 }
  0x82 PF: > { %s1048_s22 = sld [smem:[#allocation15_spill]]  ;;  %s419_s0 = sshll.u32 %s695_s16, 9 }
  0x83   : > { %s1049_s3 = sld [smem:[#allocation19_spill]]  ;;  %s284_s7 = sshll.u32 %s929_s30, 4  ;;  %s946_s7 = int_to_ptr.vmem [resolvable:$true] %s284_s7 }
  0x84   : > { %s950_s8 = scalar_lea.sflag [#allocation5], %s214_s27  ;;  %s581_s12 = scalar_lea.vmem %s946_s7, 512 }
  0x85   : > { %p582_p0 = scmp.ne.s32.totalorder %s946_s7, %s581_s12  ;;  %s714_s16 = smov [#allocation8]  }
  0x86   : > { %s585_s21 = sshll.u32 %s714_s16, 4  ;;  %s586_s21 = int_to_ptr.vmem [resolvable:$false] %s585_s21 }
  0x87   : > { %s587_s25 = scalar_lea.vmem %s586_s21, 1024  ;;  %p588_p8 = scmp.lt.s32.totalorder %s946_s7, %s586_s21 }
  0x88   : > { %p1050_p9 = scmp.ne.s32.totalorder %s1048_s22, 0  ;;  %p589_p7 = scmp.lt.s32.totalorder %s587_s25, %s581_s12 }
  0x89   : > { %s943_s6 = scalar_lea.hbm %s1049_s3, %s419_s0 }
  0x8a   : > { %p583_p11 = pnand %p582_p0, %p1050_p9  ;;  %p590_p4 = por %p589_p7, %p588_p8 }
  0x8c   : > { %p584_p5 = pneg %p583_p11 }
  0x8e   : > { %p591_p13 = pnand %p590_p4, %p584_p5 }
  0x90   : > { %594 = shalt.err (!%p591_p13)
}
  0x91   : > { %s595_s4 = scalar_lea.hbm %s943_s6, 512  ;;  %s599_s2 = scalar_lea.hbm %s1049_s3, 1024 }
  0x92   : > { %p596_p1 = scmp.ne.s32.totalorder %s943_s6, %s595_s4  ;;  %p600_p3 = scmp.lt.u32.totalorder %s943_s6, %s1049_s3 }
  0x93   : > { %p601_p6 = scmp.lt.u32.totalorder %s599_s2, %s595_s4  ;;  %p603_p0 = scmp.lt.u32.totalorder %s595_s4, %s943_s6 }
  0x94   : > { %p597_p2 = pnand %p596_p1, %p1050_p9 }
  0x95   : > { %p602_p10 = por %p601_p6, %p600_p3 }
  0x96   : > { %p598_p12 = pneg %p597_p2 }
  0x97   : > { %p604_p11 = por %p603_p0, %p602_p10 }
  0x99   : > { %p605_p5 = pnand %p604_p11, %p598_p12 }
  0x9b   : > { %608 = shalt.err (!%p605_p5)
}
  0x9c   : > { %s715_s30 = smov 256   ;;  %s716_s23 = smov 16  }
  0x9d   : > { %426 = dma.vmem_to_hbm [thread:$0]  (%p1050_p9), %s946_s7, 512, %s943_s6, %s950_s8, %s715_s30, %s715_s30, %s716_s23  }
  0x9e PF: > { %s1051_s26 = sld [smem:[#allocation14_spill]]  ;;  %s1052_s20 = sld [smem:[#allocation12_spill]] }
  0x9f   : > { %s1053_s0 = sld [smem:[#allocation16_spill]] }
  0xa4   : > { %p443_p8 = scmp.ge.s32.totalorder %s1051_s26, 2  ;;  %s299_s15 = sand.u32 1, %s1052_s20  }
  0xa5   : > { %p1054_p7 = scmp.ne.s32.totalorder %s1053_s0, 0  ;;  %s300_s17 = scalar_lea.sflag [#allocation5], %s299_s15 }
  0xa7   : > { %p437_p4 = pnand %p443_p8, %p1054_p7 }
  0xa9   : > { %662 = dma.done.wait (!%p437_p4), %s300_s17, 512  }
  0xaa   : > { %664 = vsyncadd (!%p437_p4), %s300_s17, 4294966784  ;;  %s19_s21 = sadd.s32 1, %s1051_s26   ;;  %s1055_s12 = smov %s873_s9 }
  0xab   : > { %p16_p13 = scmp.ge.s32.totalorder %s19_s21, 18   ;;  %s1056_s15 = sld [smem:[#allocation13_spill]] }
  0xac   : > { %s1057_s17 = sld [smem:[#allocation17_spill]]  ;;  %s1058_s9 = smov %s671_s10 }
  0xad   : > { %s1059_s10 = smov %s675_s11  ;;  %s1060_s11 = smov %s1055_s12 }
  0xae   : > { %s1061_s12 = smov %s683_s13  ;;  %s1062_s13 = smov %s687_s14 }
  0xaf   : > { %s1063_s14 = smov %s878_s19  ;;  %s1064_s16 = smov %s703_s18 }
  0xb0   : > { %s1065_s18 = smov %s1072_s5  ;;  %s1066_s19 = smov %s19_s21 }
  0xb1   :  { %18 = sbr.rel (!%p16_p13) target bundleno = 13 (0xd), region = 86 }
  0xb8   :  { %305 = vsyncpa [#allocation4], 1 }
  0xb9   :  { %307 = vsyncpa [#allocation4 + $0x1], 1 }
  0xba   :  { %308 = vsyncpa [#allocation5], 1 }
  0xbb   :  { %310 = vsyncpa [#allocation5 + $0x1], 1 }
  0xbc   :  { %311 = vsyncpa [#allocation6], 1 }
  0xbd   :  { %313 = vsyncpa [#allocation6 + $0x1], 1 }

</bundles_post_ra>
